<compile_context>
chip_gen: v5e
topology: v5e:2x2
jax: 0.10.0
libtpu: 0.0.40
codegen_flags: <defaults>
</compile_context>

<pallas_src>
import functools

import jax
import jax.numpy as jnp
from jax.experimental import pallas as pl
from jax.experimental.pallas import tpu as pltpu


# ----------------------------------------------------------------------------
# Fused kernel: backbone layers + concat + gather/mask + masked mean + head
# ----------------------------------------------------------------------------
def _fused_kernel(x_ref, lw_ref, lb_ref, idx_ref, msk_ref, poolT_ref,
                  hw_ref, hb_ref, out_ref, *, num_layers, num_hidden_states):
    bt, L, H = x_ref.shape
    WS = idx_ref.shape[2]

    # ---- synthetic backbone: num_layers x (dense + tanh); activations stay
    #      resident on-chip (no HBM bounce between layers).
    h = x_ref[...].reshape(bt * L, H)                       # (bt*L, H) f32
    hidden = []
    for layer in range(num_layers):
        w = lw_ref[layer]                                   # (H, H) bf16 (MXU)
        b = lb_ref[layer]                                   # (1, H) f32
        y = jnp.dot(h.astype(jnp.bfloat16), w,
                    preferred_element_type=jnp.float32)
        h = jnp.tanh(y + b)                                 # f32 epilogue
        hidden.append(h)

    # torch.cat(hidden_states[-num_hidden_states:], dim=-1), done in VMEM
    sel = hidden[-num_hidden_states:]
    emb = sel[0] if len(sel) == 1 else jnp.concatenate(sel, axis=-1)
    F = emb.shape[-1]
    emb = emb.reshape(bt, L, F)                             # (bt, L, F)

    # ---- collect_word_subword_embeddings via one-hot gather (lane-major idx)
    idx = idx_ref[...]                                      # (bt, 1, WS) int32
    msk = msk_ref[...]                                      # (bt, 1, WS) f32
    pos = jax.lax.broadcasted_iota(jnp.int32, (bt, L, WS), 1)
    onehot = jnp.where(pos == idx, msk, 0.0)                # masked one-hot

    # fold the constant sub-word -> word pooling matrix and the masked-mean
    # normalisation into a per-(batch, seq-pos, word) weight A, so the pooled
    # word embedding is a single (L,W)^T x (L,F) matmul per batch item.
    A = jnp.einsum('blj,jw->blw', onehot, poolT_ref[...],
                   preferred_element_type=jnp.float32)      # (bt, L, W)
    denom = jnp.sum(A, axis=1, keepdims=True)               # (bt, 1, W) = #subwords
    inv = pl.reciprocal(jnp.maximum(denom, 1.0), approx=True)
    A = A * inv                                             # lane-aligned bcast

    pooled = jnp.einsum('blw,blf->bwf', A, emb,
                        preferred_element_type=jnp.float32)  # (bt, W, F)

    # linear head; Cpad = 128 -> lane-dense output stores
    logits = jnp.einsum('bwf,fc->bwc', pooled, hw_ref[...],
                        preferred_element_type=jnp.float32)  # (bt, W, Cpad)
    out_ref[...] = (logits + hb_ref[...]).astype(out_ref.dtype)


def _pick_batch_block(B, max_bt=8):
    # batch several items per grid step (amortize per-step overhead) but keep
    # >= 2 grid steps when possible so both v7x TensorCores get work.
    for bt in range(min(max_bt, B), 0, -1):
        if B % bt == 0 and B // bt >= 2:
            return bt
    return B


# ----------------------------------------------------------------------------
# ToxicModel forward
# ----------------------------------------------------------------------------
def toxic_model_forward(params, input_ids, attention_masks, token_type_ids,
                        word_bpe_matrices, word_masks, num_hidden_states=2):
    B, L = input_ids.shape
    H = params["tok_emb"].shape[1]
    NL = len(params["layers"])
    _, W, S = word_bpe_matrices.shape
    WS = W * S
    F = H * num_hidden_states
    C = params["head_w"].shape[1]
    CPAD = ((C + 127) // 128) * 128

    # Embedding lookup + type emb + attention mask stays as one XLA fusion.
    # TODO(synk): fold into the Pallas kernel via scalar-prefetched input_ids
    # driving a per-row DMA gather (moderate win, lower priority).
    x = params["tok_emb"][input_ids] + params["type_emb"][token_type_ids]
    x = (x * attention_masks[..., None]).astype(jnp.float32)

    # stacked layer weights (bf16 for the MXU) / biases, loaded once
    lw = jnp.stack([w for (w, _) in params["layers"]]).astype(jnp.bfloat16)
    lb = jnp.stack([b for (_, b) in params["layers"]]).reshape(NL, 1, H)
    lb = lb.astype(jnp.float32)

    # lane-major gather indices / masks: (B, 1, W*S)
    idx = word_bpe_matrices.reshape(B, 1, WS).astype(jnp.int32)
    msk = word_masks.reshape(B, 1, WS).astype(jnp.float32)

    # constant sub-word -> word pooling matrix, hoisted out of the kernel body
    poolT = (jnp.arange(WS)[:, None] // S
             == jnp.arange(W)[None, :]).astype(jnp.float32)          # (WS, W)

    # head weights padded to a lane-dense output width
    hw = jnp.zeros((F, CPAD), jnp.float32).at[:, :C].set(
        params["head_w"].astype(jnp.float32))
    hb = jnp.zeros((1, CPAD), jnp.float32).at[:, :C].set(
        params["head_b"].reshape(1, C).astype(jnp.float32))

    bt = _pick_batch_block(B)
    grid = (B // bt,)

    kernel = functools.partial(_fused_kernel, num_layers=NL,
                               num_hidden_states=num_hidden_states)

    out_pad = pl.pallas_call(
        kernel,
        out_shape=jax.ShapeDtypeStruct((B, W, CPAD), jnp.float32),
        grid_spec=pltpu.PrefetchScalarGridSpec(
            num_scalar_prefetch=0,
            grid=grid,
            in_specs=[
                pl.BlockSpec((bt, L, H), lambda g: (g, 0, 0)),   # x
                pl.BlockSpec((NL, H, H), lambda g: (0, 0, 0)),   # layer weights
                pl.BlockSpec((NL, 1, H), lambda g: (0, 0, 0)),   # layer biases
                pl.BlockSpec((bt, 1, WS), lambda g: (g, 0, 0)),  # idx (lane-major)
                pl.BlockSpec((bt, 1, WS), lambda g: (g, 0, 0)),  # mask (lane-major)
                pl.BlockSpec((WS, W), lambda g: (0, 0)),         # pooling const
                pl.BlockSpec((F, CPAD), lambda g: (0, 0)),       # head W (padded)
                pl.BlockSpec((1, CPAD), lambda g: (0, 0)),       # head b (padded)
            ],
            out_specs=pl.BlockSpec((bt, W, CPAD), lambda g: (g, 0, 0)),
        ),
        compiler_params=pltpu.CompilerParams(
            dimension_semantics=("parallel",)),
    )(x, lw, lb, idx, msk, poolT, hw, hb)

    return out_pad[:, :, :C]


# ----------------------------------------------------------------------------
# pure-JAX reference (f32, exact divide) for a sanity check
# ----------------------------------------------------------------------------
def _reference_forward(params, input_ids, attention_masks, token_type_ids,
                       word_bpe_matrices, word_masks, num_hidden_states):
    B, L = input_ids.shape
    x = params["tok_emb"][input_ids] + params["type_emb"][token_type_ids]
    x = x * attention_masks[..., None]
    hidden, h = [], x
    for (w, b) in params["layers"]:
        h = jnp.tanh(h @ w + b)
        hidden.append(h)
    emb = jnp.concatenate(hidden[-num_hidden_states:], axis=-1)       # (B,L,F)
    _, W, S = word_bpe_matrices.shape
    flat = word_bpe_matrices.reshape(B, W * S)
    gathered = jnp.take_along_axis(emb, flat[..., None], axis=1)      # (B,W*S,F)
    gathered = gathered.reshape(B, W, S, -1) * word_masks[..., None]
    denom = jnp.maximum(word_masks.sum(-1, keepdims=True), 1.0)       # (B,W,1)
    pooled = gathered.sum(2) / denom
    return pooled @ params["head_w"] + params["head_b"]


# ----------------------------------------------------------------------------
# main
# ----------------------------------------------------------------------------
if __name__ == "__main__":
    B = 2           # batch
    L = 16          # sub-word sequence length
    H = 32          # backbone hidden size per layer
    NUM_LAYERS = 2
    NUM_HIDDEN_STATES = 2
    W = 8           # max words
    S = 4           # max sub-words per word
    C = 2           # num labels
    VOCAB = 50

    key = jax.random.PRNGKey(0)
    keys = jax.random.split(key, 10)

    params = {
        "tok_emb": 0.02 * jax.random.normal(keys[0], (VOCAB, H), jnp.float32),
        "type_emb": 0.02 * jax.random.normal(keys[1], (2, H), jnp.float32),
        "layers": [
            (0.1 * jax.random.normal(keys[2], (H, H), jnp.float32),
             0.01 * jax.random.normal(keys[3], (H,), jnp.float32)),
            (0.1 * jax.random.normal(keys[4], (H, H), jnp.float32),
             0.01 * jax.random.normal(keys[5], (H,), jnp.float32)),
        ],
        "head_w": 0.1 * jax.random.normal(
            keys[6], (H * NUM_HIDDEN_STATES, C), jnp.float32),
        "head_b": 0.01 * jax.random.normal(keys[7], (C,), jnp.float32),
    }

    input_ids = jax.random.randint(keys[8], (B, L), 0, VOCAB, jnp.int32)
    token_type_ids = (jax.random.uniform(keys[9], (B, L)) > 0.5).astype(jnp.int32)
    attention_masks = jnp.ones((B, L), jnp.float32)

    k_a, k_b = jax.random.split(keys[8])
    word_bpe_matrices = jax.random.randint(k_a, (B, W, S), 0, L, jnp.int32)
    word_masks = (jax.random.uniform(k_b, (B, W, S)) > 0.3).astype(jnp.float32)

    out = toxic_model_forward(params, input_ids, attention_masks, token_type_ids,
                              word_bpe_matrices, word_masks,
                              num_hidden_states=NUM_HIDDEN_STATES)
    out = jax.block_until_ready(out)
    assert out.shape == (B, W, C)

    ref = _reference_forward(params, input_ids, attention_masks, token_type_ids,
                             word_bpe_matrices, word_masks, NUM_HIDDEN_STATES)
    assert jnp.allclose(out, ref, atol=1e-2, rtol=1e-2), "mismatch vs reference"

    print("KERNEL_OK")
</pallas_src>

<mosaic_0001>
module attributes {stable_mosaic.version = 11 : i64} {
  func.func @_fused_kernel(%arg0: i32, %arg1: memref<1x16x32xf32, #tpu.memory_space<vmem>>, %arg2: memref<2x32x32xbf16, #tpu.memory_space<vmem>>, %arg3: memref<2x1x32xf32, #tpu.memory_space<vmem>>, %arg4: memref<1x1x32xi32, #tpu.memory_space<vmem>>, %arg5: memref<1x1x32xf32, #tpu.memory_space<vmem>>, %arg6: memref<32x8xf32, #tpu.memory_space<vmem>>, %arg7: memref<64x128xf32, #tpu.memory_space<vmem>>, %arg8: memref<1x128xf32, #tpu.memory_space<vmem>>, %arg9: memref<1x8x128xf32, #tpu.memory_space<vmem>>) attributes {dimension_semantics = [#tpu.dimension_semantics<parallel>], iteration_bounds = array<i64: 2>, scalar_prefetch = 0 : i64, scratch_operands = 0 : i64, tpu.core_type = #tpu.core_type<tc>, window_params = [{transform_indices = @transform_0, window_bounds = array<i64: 1, 16, 32>}, {pipeline_mode = #tpu.pipeline_mode<synchronous>, transform_indices = @transform_1, window_bounds = array<i64: 2, 32, 32>}, {pipeline_mode = #tpu.pipeline_mode<synchronous>, transform_indices = @transform_2, window_bounds = array<i64: 2, 1, 32>}, {transform_indices = @transform_3, window_bounds = array<i64: 1, 1, 32>}, {transform_indices = @transform_4, window_bounds = array<i64: 1, 1, 32>}, {pipeline_mode = #tpu.pipeline_mode<synchronous>, transform_indices = @transform_5, window_bounds = array<i64: 32, 8>}, {pipeline_mode = #tpu.pipeline_mode<synchronous>, transform_indices = @transform_6, window_bounds = array<i64: 64, 128>}, {pipeline_mode = #tpu.pipeline_mode<synchronous>, transform_indices = @transform_7, window_bounds = array<i64: 1, 128>}, {transform_indices = @transform_8, window_bounds = array<i64: 1, 8, 128>}]} {
    %c0 = arith.constant 0 : index
    %c0_0 = arith.constant 0 : index
    %c0_1 = arith.constant 0 : index
    %0 = vector.load %arg1[%c0, %c0_0, %c0_1] : memref<1x16x32xf32, #tpu.memory_space<vmem>>, vector<1x16x32xf32>
    %1 = vector.shape_cast %0 : vector<1x16x32xf32> to vector<16x32xf32>
    %c0_2 = arith.constant 0 : index
    %c0_3 = arith.constant 0 : index
    %c0_4 = arith.constant 0 : index
    %2 = vector.load %arg2[%c0_2, %c0_3, %c0_4] : memref<2x32x32xbf16, #tpu.memory_space<vmem>>, vector<1x32x32xbf16>
    %3 = vector.shape_cast %2 : vector<1x32x32xbf16> to vector<32x32xbf16>
    %c0_5 = arith.constant 0 : index
    %c0_6 = arith.constant 0 : index
    %c0_7 = arith.constant 0 : index
    %4 = vector.load %arg3[%c0_5, %c0_6, %c0_7] : memref<2x1x32xf32, #tpu.memory_space<vmem>>, vector<1x1x32xf32>
    %5 = vector.shape_cast %4 : vector<1x1x32xf32> to vector<1x32xf32>
    %6 = arith.truncf %1 : vector<16x32xf32> to vector<16x32xbf16>
    %cst = arith.constant dense<0.000000e+00> : vector<16x32xf32>
    %7 = tpu.matmul %6, %3, %cst {dimension_numbers = #tpu.dot_dimension_numbers<[1], [0], [0], [1], [0, 0, 1, 1], [], []>} : vector<16x32xbf16>, vector<32x32xbf16>, vector<16x32xf32> -> vector<16x32xf32>
    %8 = vector.broadcast %5 : vector<1x32xf32> to vector<16x32xf32>
    %9 = arith.addf %7, %8 : vector<16x32xf32>
    %10 = math.tanh %9 : vector<16x32xf32>
    %c1 = arith.constant 1 : index
    %c0_8 = arith.constant 0 : index
    %c0_9 = arith.constant 0 : index
    %11 = vector.load %arg2[%c1, %c0_8, %c0_9] : memref<2x32x32xbf16, #tpu.memory_space<vmem>>, vector<1x32x32xbf16>
    %12 = vector.shape_cast %11 : vector<1x32x32xbf16> to vector<32x32xbf16>
    %c1_10 = arith.constant 1 : index
    %c0_11 = arith.constant 0 : index
    %c0_12 = arith.constant 0 : index
    %13 = vector.load %arg3[%c1_10, %c0_11, %c0_12] : memref<2x1x32xf32, #tpu.memory_space<vmem>>, vector<1x1x32xf32>
    %14 = vector.shape_cast %13 : vector<1x1x32xf32> to vector<1x32xf32>
    %15 = arith.truncf %10 : vector<16x32xf32> to vector<16x32xbf16>
    %cst_13 = arith.constant dense<0.000000e+00> : vector<16x32xf32>
    %16 = tpu.matmul %15, %12, %cst_13 {dimension_numbers = #tpu.dot_dimension_numbers<[1], [0], [0], [1], [0, 0, 1, 1], [], []>} : vector<16x32xbf16>, vector<32x32xbf16>, vector<16x32xf32> -> vector<16x32xf32>
    %17 = vector.broadcast %14 : vector<1x32xf32> to vector<16x32xf32>
    %18 = arith.addf %16, %17 : vector<16x32xf32>
    %19 = math.tanh %18 : vector<16x32xf32>
    %20 = tpu.concatenate %10, %19 in 1 : vector<16x32xf32>, vector<16x32xf32> -> vector<16x64xf32>
    %21 = vector.shape_cast %20 : vector<16x64xf32> to vector<1x16x64xf32>
    %c0_14 = arith.constant 0 : index
    %c0_15 = arith.constant 0 : index
    %c0_16 = arith.constant 0 : index
    %22 = vector.load %arg4[%c0_14, %c0_15, %c0_16] : memref<1x1x32xi32, #tpu.memory_space<vmem>>, vector<1x1x32xi32>
    %c0_17 = arith.constant 0 : index
    %c0_18 = arith.constant 0 : index
    %c0_19 = arith.constant 0 : index
    %23 = vector.load %arg5[%c0_17, %c0_18, %c0_19] : memref<1x1x32xf32, #tpu.memory_space<vmem>>, vector<1x1x32xf32>
    %24 = tpu.iota {dimensions = array<i32: 1>} : vector<1x16x32xi32>
    %25 = vector.broadcast %22 : vector<1x1x32xi32> to vector<1x16x32xi32>
    %26 = arith.cmpi eq, %24, %25 : vector<1x16x32xi32>
    %cst_20 = arith.constant 0.000000e+00 : f32
    %27 = vector.shape_cast %23 : vector<1x1x32xf32> to vector<1x1x32xf32>
    %28 = vector.broadcast %27 : vector<1x1x32xf32> to vector<1x16x32xf32>
    %29 = vector.broadcast %cst_20 : f32 to vector<1x16x32xf32>
    %30 = arith.select %26, %28, %29 : vector<1x16x32xi1>, vector<1x16x32xf32>
    %c0_21 = arith.constant 0 : index
    %c0_22 = arith.constant 0 : index
    %31 = vector.load %arg6[%c0_21, %c0_22] : memref<32x8xf32, #tpu.memory_space<vmem>>, vector<32x8xf32>
    "tpu.trace_start"() <{level = 10 : i32, message = "blj,jw->blw"}> : () -> ()
    %cst_23 = arith.constant dense<0.000000e+00> : vector<1x16x8xf32>
    %32 = tpu.matmul %30, %31, %cst_23 {dimension_numbers = #tpu.dot_dimension_numbers<[2], [0], [0, 1], [1], [0, 0, 0, 1, 1, 1], [], []>} : vector<1x16x32xf32>, vector<32x8xf32>, vector<1x16x8xf32> -> vector<1x16x8xf32>
    "tpu.trace_stop"() : () -> ()
    %cst_24 = arith.constant dense<0.000000e+00> : vector<1x8xf32>
    %33 = vector.multi_reduction <add>, %32, %cst_24 [1] : vector<1x16x8xf32> to vector<1x8xf32>
    %34 = vector.shape_cast %33 : vector<1x8xf32> to vector<1x1x8xf32>
    %cst_25 = arith.constant 1.000000e+00 : f32
    %35 = vector.broadcast %cst_25 : f32 to vector<1x1x8xf32>
    %36 = arith.maximumf %34, %35 : vector<1x1x8xf32>
    %37 = tpu.reciprocal %36 {approx = true} : vector<1x1x8xf32> -> vector<1x1x8xf32>
    %38 = vector.broadcast %37 : vector<1x1x8xf32> to vector<1x16x8xf32>
    %39 = arith.mulf %32, %38 : vector<1x16x8xf32>
    "tpu.trace_start"() <{level = 10 : i32, message = "blw,blf->bwf"}> : () -> ()
    %cst_26 = arith.constant dense<0.000000e+00> : vector<1x8x64xf32>
    %40 = tpu.matmul %39, %21, %cst_26 {dimension_numbers = #tpu.dot_dimension_numbers<[1], [1], [2], [2], [0, 0, 0, 2, 1, 2], [0], [0]>} : vector<1x16x8xf32>, vector<1x16x64xf32>, vector<1x8x64xf32> -> vector<1x8x64xf32>
    "tpu.trace_stop"() : () -> ()
    %c0_27 = arith.constant 0 : index
    %c0_28 = arith.constant 0 : index
    %41 = vector.load %arg7[%c0_27, %c0_28] : memref<64x128xf32, #tpu.memory_space<vmem>>, vector<64x128xf32>
    "tpu.trace_start"() <{level = 10 : i32, message = "bwf,fc->bwc"}> : () -> ()
    %cst_29 = arith.constant dense<0.000000e+00> : vector<1x8x128xf32>
    %42 = tpu.matmul %40, %41, %cst_29 {dimension_numbers = #tpu.dot_dimension_numbers<[2], [0], [0, 1], [1], [0, 0, 0, 1, 1, 1], [], []>} : vector<1x8x64xf32>, vector<64x128xf32>, vector<1x8x128xf32> -> vector<1x8x128xf32>
    "tpu.trace_stop"() : () -> ()
    %c0_30 = arith.constant 0 : index
    %c0_31 = arith.constant 0 : index
    %43 = vector.load %arg8[%c0_30, %c0_31] : memref<1x128xf32, #tpu.memory_space<vmem>>, vector<1x128xf32>
    %44 = vector.shape_cast %43 : vector<1x128xf32> to vector<1x1x128xf32>
    %45 = vector.broadcast %44 : vector<1x1x128xf32> to vector<1x8x128xf32>
    %46 = arith.addf %42, %45 : vector<1x8x128xf32>
    %c0_32 = arith.constant 0 : index
    %c0_33 = arith.constant 0 : index
    %c0_34 = arith.constant 0 : index
    %47 = vector.load %arg9[%c0_32, %c0_33, %c0_34] : memref<1x8x128xf32, #tpu.memory_space<vmem>>, vector<1x8x128xf32>
    tpu.vector_store %arg9[%c0_32, %c0_33, %c0_34], %46 {strides = array<i32>} : memref<1x8x128xf32, #tpu.memory_space<vmem>>, vector<1x8x128xf32>,
    return
  }
  func.func @transform_0(%arg0: i32) -> (i32, i32, i32) {
    %c0_i32 = arith.constant 0 : i32
    %c0_i32_0 = arith.constant 0 : i32
    %c0_i32_1 = arith.constant 0 : i32
    return %arg0, %c0_i32, %c0_i32_0 : i32, i32, i32
  }
  func.func @transform_1(%arg0: i32) -> (i32, i32, i32) {
    %c0_i32 = arith.constant 0 : i32
    %c0_i32_0 = arith.constant 0 : i32
    %c0_i32_1 = arith.constant 0 : i32
    %c0_i32_2 = arith.constant 0 : i32
    return %c0_i32, %c0_i32_0, %c0_i32_1 : i32, i32, i32
  }
  func.func @transform_2(%arg0: i32) -> (i32, i32, i32) {
    %c0_i32 = arith.constant 0 : i32
    %c0_i32_0 = arith.constant 0 : i32
    %c0_i32_1 = arith.constant 0 : i32
    %c0_i32_2 = arith.constant 0 : i32
    return %c0_i32, %c0_i32_0, %c0_i32_1 : i32, i32, i32
  }
  func.func @transform_3(%arg0: i32) -> (i32, i32, i32) {
    %c0_i32 = arith.constant 0 : i32
    %c0_i32_0 = arith.constant 0 : i32
    %c0_i32_1 = arith.constant 0 : i32
    return %arg0, %c0_i32, %c0_i32_0 : i32, i32, i32
  }
  func.func @transform_4(%arg0: i32) -> (i32, i32, i32) {
    %c0_i32 = arith.constant 0 : i32
    %c0_i32_0 = arith.constant 0 : i32
    %c0_i32_1 = arith.constant 0 : i32
    return %arg0, %c0_i32, %c0_i32_0 : i32, i32, i32
  }
  func.func @transform_5(%arg0: i32) -> (i32, i32) {
    %c0_i32 = arith.constant 0 : i32
    %c0_i32_0 = arith.constant 0 : i32
    %c0_i32_1 = arith.constant 0 : i32
    return %c0_i32, %c0_i32_0 : i32, i32
  }
  func.func @transform_6(%arg0: i32) -> (i32, i32) {
    %c0_i32 = arith.constant 0 : i32
    %c0_i32_0 = arith.constant 0 : i32
    %c0_i32_1 = arith.constant 0 : i32
    return %c0_i32, %c0_i32_0 : i32, i32
  }
  func.func @transform_7(%arg0: i32) -> (i32, i32) {
    %c0_i32 = arith.constant 0 : i32
    %c0_i32_0 = arith.constant 0 : i32
    %c0_i32_1 = arith.constant 0 : i32
    return %c0_i32, %c0_i32_0 : i32, i32
  }
  func.func @transform_8(%arg0: i32) -> (i32, i32, i32) {
    %c0_i32 = arith.constant 0 : i32
    %c0_i32_0 = arith.constant 0 : i32
    %c0_i32_1 = arith.constant 0 : i32
    return %arg0, %c0_i32, %c0_i32_0 : i32, i32, i32
  }
}

</mosaic_0001>

<bundles_post_ra>
// kernel: tpu_custom_call.1
= control target key start
LH: loop header
LB: loop body
LE: loop exit
PB: predicated region body
PF: predicated region fallthrough
CT: control target
= control target key end

     0   :  { %13 = vsyncpa [#allocation3], 0  ;;  %s1186_s0 = inlined_call_operand.vmem [shape: f32[2,16,32], index: 0, kind: input, shape index: {}]   ;;  %s1187_s1 = inlined_call_operand.hbm [shape: bf16[2,32,32], index: 1, kind: input, shape index: {}]   ;;  %s1188_s2 = inlined_call_operand.vmem [shape: f32[2,1,32], index: 2, kind: input, shape index: {}]   ;;  %s1189_s3 = inlined_call_operand.vmem [shape: s32[2,1,32], index: 3, kind: input, shape index: {}]   ;;  %s1190_s4 = inlined_call_operand.vmem [shape: f32[2,1,32], index: 4, kind: input, shape index: {}]   ;;  %s1191_s5 = inlined_call_operand.vmem [shape: f32[32,8], index: 5, kind: input, shape index: {}]   ;;  %s1192_s6 = inlined_call_operand.hbm [shape: f32[64,128], index: 6, kind: input, shape index: {}]   ;;  %s1193_s7 = inlined_call_operand.vmem [shape: f32[1,128], index: 7, kind: input, shape index: {}]   ;;  %s1194_s8 = inlined_call_operand.hbm [shape: f32[2,8,128], index: 8, kind: output, shape index: {}]  }
   0x1   :  { %14 = vsyncpa [#allocation6], 0 }
   0x2   :  { %15 = vsyncpa [#allocation4], 0 }
   0x3   :  { %17 = vsyncpa [#allocation4 + $0x1], 0  ;;  %s1043_s27 = smov 0   ;;  %s1045_s28 = smov 0  }
   0x4   :  { %s1047_s29 = smov 0   ;;  %s1049_s30 = smov 0  }
   0x5 LB: > { %s1064_s9 = sadd.s32 4294967295, %s989_s30   ;;  %s730_s10 = sadd.s32 4294967294, %s989_s30   ;;  %s989_s30 = sphi %s1049_s30, %s1201_s30   ;;  %s985_s29 = sphi %s1047_s29, %s1200_s29   ;;  %s981_s28 = sphi %s1045_s28, %s1199_s28   ;;  %s977_s27 = sphi %s1043_s27, %s1198_s27  }
   0x6   : > { %s1068_s11 = sadd.s32 1, %s989_s30   ;;  %s213_s12 = sadd.s32 1, %s985_s29 }
   0x7   : > { %s210_s13 = ssub.s32 %s989_s30, %s1068_s11  ;;  %p223_p0 = scmp.ne.s32.totalorder %s985_s29, %s981_s28 }
   0x8   : > { %p211_p1 = scmp.eq.s32.totalorder %s210_s13, 0  ;;  %p224_p2 = scmp.eq.s32.totalorder %s1064_s9, 1 }
   0x9   : > { %p229_p3 = scmp.ne.s32.totalorder %s981_s28, %s977_s27  ;;  %p230_p4 = scmp.eq.s32.totalorder %s730_s10, 1 }
   0xa   : > { %s1079_s14 = scalar_select %p211_p1, %s985_s29, %s213_s12  }
   0xb   : > { %p1081_p5 = por %p224_p2, %p223_p0  ;;  %p1085_p6 = por %p230_p4, %p229_p3 }
   0xc   : > { %p731_p7 = scmp.ge.s32.totalorder %s989_s30, 1  ;;  %p237_p8 = scmp.lt.s32.totalorder %s989_s30, 3 }
   0xd   : > { %p794_p9 = scmp.eq.s32.totalorder %s1064_s9, 0  ;;  %s248_s20 = sshll.u32 %s1187_s1, 4  ;;  %s249_s20 = int_to_ptr.hbm [resolvable:$true] %s248_s20 }
   0xe   : > { %p1092_p10 = pnand %p731_p7, %p237_p8  ;;  %s991_s21 = smov [#allocation2]  }
   0xf   : > { %s250_s22 = sshll.u32 %s991_s21, 4  ;;  %s268_s25 = sshll.u32 %s1192_s6, 4  ;;  %s251_s22 = int_to_ptr.vmem [resolvable:$true] %s250_s22  ;;  %s269_s25 = int_to_ptr.hbm [resolvable:$true] %s268_s25 }
  0x10   : > { %p783_p11 = pneg %p1092_p10  ;;  %s992_s26 = smov 64  }
  0x11   : > { %s993_s10 = smov 4   ;;  %s994_s12 = smov [#allocation5]  }
  0x12   : > { %p784_p12 = pnand %p794_p9, %p783_p11  ;;  %s270_s13 = sshll.u32 %s994_s12, 4  ;;  %s271_s13 = int_to_ptr.vmem [resolvable:$true] %s270_s13 }
  0x13   : > { %s995_s18 = smov 128   ;;  %s996_s19 = smov 8  }
  0x14   : > { %786 = dma.hbm_to_vmem [thread:$0]  (!%p784_p12), %s249_s20, 512, %s251_s22, [#allocation3], %s992_s26, %s992_s26, %s993_s10  }
  0x15   : > { %789 = dma.hbm_to_vmem [thread:$0]  (!%p784_p12), %s269_s25, 1024, %s271_s13, [#allocation6], %s995_s18, %s995_s18, %s996_s19  }
  0x16   : > { %309 = sbr.rel (%p1092_p10) target bundleno = 797 (0x31d), region = 52 }
  0x1b   : > { %964 = dma.done.wait (%p794_p9), [#allocation3], 512  }
  0x1c   : > { %966 = vsyncadd (%p794_p9), [#allocation3], 4294966784 }
  0x1d   : > { %968 = dma.done.wait (%p794_p9), [#allocation6], 1024  }
  0x1e   : > { %970 = vsyncadd (%p794_p9), [#allocation6], 4294966272  ;;  %p355_p13 = scmp.lt.s32.totalorder %s1064_s9, 1  ;;  %v770_v0 = vld [vmem:[#allocation2 + $0x8] sm:$0xff]  ;;  %v769_v1 = vld [vmem:[#allocation2] sm:$0xff]  ;;  %vm390_vm0 = vcmask 261120   ;;  %v464_v8 = vlaneseq }
  0x1f   : > { %v478_v3 = vld [vmem:[%s1191_s5 + $0x18] sm:$0xff]  ;;  %v477_v4 = vld [vmem:[%s1191_s5 + $0x10] sm:$0xff]  ;;  %400 = vmatpush.bf16.msra.mxu0 %v770_v0  ;;  %v476_v6 = vld [vmem:[%s1191_s5 + $0x8] sm:$0xff]  ;;  %vm508_vm3 = vcmask 64512   ;;  %s997_s13 = smov 32   ;;  %vm554_vm4 = vcmask 130048  }
  0x20   : > { %s356_s20 = scalar_select %p355_p13, %s1064_s9, 1  ;;  %497 = vmatpush.msra.mxu2 %v478_v3  ;;  %v465_v9 = vshrl.u32 %v464_v8, 7  ;;  %v475_v12 = vld [vmem:[%s1191_s5] sm:$0xff]  ;;  %v772_v16 = vld [vmem:[#allocation2 + $0x18] sm:$0xff]  ;;  %v771_v17 = vld [vmem:[#allocation2 + $0x10] sm:$0xff]  ;;  %vm590_vm5 = vcmask 523264  }
  0x21   : > { %442 = vmatpush.bf16.msra.mxu1 %v772_v16  ;;  %v844_v19 = vld [vmem:[%s1188_s2] ss:$0 sm:$0xff]  ;;  %v847_v28 = vld [vmem:[%s1188_s2 + $0x1] ss:$0 sm:$0xff]  ;;  %v585_v54 = vld [vmem:[#allocation5 + $0x38] sm:$0xff]  ;;  %s352_s18 = sand.u32 1, %s981_s28  }
  0x22   : > { %s768_s21 = sshll.u32 %s356_s20, 4  ;;  %s365_s24 = scalar_lea.vmem %s1190_s4, %s356_s20  ;;  %498 = vmatpush.msra.mxu2 %v477_v4  ;;  %v466_v14 = vadd.s32 8, %v465_v9  ;;  %v584_v55 = vld [vmem:[#allocation5 + $0x30] sm:$0xff]  ;;  %v583_v56 = vld [vmem:[#allocation5 + $0x28] sm:$0xff]  ;;  %v582_v57 = vld [vmem:[#allocation5 + $0x20] sm:$0xff] }
  0x23   : > { %s359_s23 = scalar_lea.vmem %s1186_s0, %s768_s21  ;;  %s362_s21 = scalar_lea.vmem %s1189_s3, %s356_s20  ;;  %401 = vmatpush.bf16.msra.mxu0 %v769_v1  ;;  %v846_v11 = vld [vmem:[%s365_s24] ss:$0 sm:$0xff]  ;;  %v581_v58 = vld [vmem:[#allocation5 + $0x18] sm:$0xff]  ;;  %v580_v59 = vld [vmem:[#allocation5 + $0x10] sm:$0xff] }
  0x24   : > { %v367_v2 = vld [vmem:[%s359_s23] sm:$0xff]  ;;  %v368_v5 = vld [vmem:[%s359_s23 + $0x8] sm:$0xff]  ;;  %499 = vmatpush.msra.mxu2 %v476_v6  ;;  %s738_s19 = sshll.u32 %s352_s18, 3  ;;  %s616_s12 = scalar_lea.sflag [#allocation4], %s352_s18 }
  0x25   : > { %v374_v7 = vpack.c.bf16 %v368_v5, %v367_v2  ;;  %v845_v10 = vld [vmem:[%s362_s21] ss:$0 sm:$0xff]  ;;  %443 = vmatpush.bf16.msra.mxu1 %v771_v17  ;;  %v579_v60 = vld [vmem:[#allocation5 + $0x8] sm:$0xff]  ;;  %s765_s21 = sshll.u32 %s1064_s9, 3  ;;  %s354_s20 = scalar_lea.vmem [#allocation7], %s738_s19 }
  0x26   : > { %vm468_vm1 = vcmp.eq.s32.totalorder %v465_v9, %v845_v10  ;;  %500 = vmatpush.msra.mxu2 %v475_v12  ;;  %vm469_vm2 = vcmp.eq.s32.totalorder %v466_v14, %v845_v10  ;;  %v578_v62 = vld [vmem:[#allocation5] sm:$0xff]  ;;  %s626_s24 = scalar_lea.hbm %s1194_s8, %s765_s21  ;;  %s628_s26 = sshll.u32 %s354_s20, 4  ;;  %s629_s26 = int_to_ptr.vmem [resolvable:$true] %s628_s26 }
  0x27   : > { %749 = vmatmul.msk.bf16.vlgmr.msra.gmra.mxu0 %vm390_vm0, %v374_v7  ;;  %v473_v13 = vsel %vm468_vm1, %v846_v11, 0.0  ;;  %v474_v15 = vsel %vm469_vm2, %v846_v11, 0.0  ;;  %v848_v0 = vld [vmem:[%s1193_s7] ss:$0 sm:$0xff]  ;;  %s630_s10 = sshll.u32 %s626_s24, 4  ;;  %s939_s17 = scalar_lea.hbm %s1194_s8, 16  ;;  %s631_s10 = int_to_ptr.hbm [resolvable:$true] %s630_s10 }
  0x28   : > { %760 = vmatmul.msk.f32.vlgmr.msra.gmra.mxu2 %vm390_vm0, %v473_v13 }
  0x30   : > { %761 = vmatmul.msk.f32.gmra.mxu2 %vm390_vm0, %v474_v15 }
  0xa4   : > { %v403_v18 = vpop.f32.mrf.mxu0 }
  0xa5   : > { %v404_v20 = vadd.f32 %v844_v19, %v403_v18 }
  0xa7   : > { %849 = vtanh.f32 %v404_v20 }
  0xab   : > { %v502_v26 = vpop.f32.mrf.mxu2 }
  0xac   : > { %v405_v21 = vpop.f32.mrf.mxu0  ;;  %v509_v31 = vsel %vm508_vm3, %v502_v26, 0.0 }
  0xad   : > { %v406_v22 = vadd.f32 %v844_v19, %v405_v21  ;;  %v850_v23 = vpop.eup %849 }
  0xaf   : > { %851 = vtanh.f32 %v406_v22 }
  0xb3   : > { %v505_v29 = vpop.f32.mrf.mxu2 }
  0xb4   : > { %v510_v32 = vsel %vm508_vm3, %v505_v29, 0.0 }
  0xb5   : > { %v852_v24 = vpop.eup %851  ;;  %v511_v35 = vadd.f32 %v510_v32, %v509_v31 }
  0xb6   : > { %v417_v25 = vpack.c.bf16 %v852_v24, %v850_v23 }
  0xb7   : > { %v512_v36 = vrot.slane %v511_v35, 4 }
  0xb8   : > { %759 = vmatmul.msk.bf16.vlgmr.msra.gmra.mxu1 %vm390_vm0, %v417_v25 }
  0xb9   : > { %v513_v40 = vadd.f32 %v512_v36, %v511_v35 }
  0xbb   : > { %v514_v41 = vrot.slane %v513_v40, 2 }
  0xbd   : > { %v515_v42 = vadd.f32 %v514_v41, %v513_v40 }
  0xbf   : > { %v516_v43 = vrot.slane %v515_v42, 1 }
  0xc1   : > { %v517_v44 = vadd.f32 %v516_v43, %v515_v42 }
  0xc3   : > { %v518_v45 = vmax.f32 %v517_v44, 1.0 }
 0x135   : > { %v445_v27 = vpop.f32.mrf.mxu1 }
 0x136   : > { %v446_v30 = vadd.f32 %v847_v28, %v445_v27 }
 0x138   : > { %853 = vtanh.f32 %v446_v30 }
 0x13d   : > { %v447_v33 = vpop.f32.mrf.mxu1 }
 0x13e   : > { %v448_v34 = vadd.f32 %v847_v28, %v447_v33  ;;  %v854_v37 = vpop.eup %853 }
 0x140   : > { %855 = vtanh.f32 %v448_v34 }
 0x141   : > { %857 = vrcp.f32 %v518_v45 }
 0x146   : > { %v856_v38 = vpop.eup %855 }
 0x147   : > { %v839_v39 = vpack.i.bf16 %v854_v37, %v856_v38  ;;  %v858_v46 = vpop.eup %857 }
 0x148   : > { %v520_v47 = vmul.f32 %v858_v46, %v502_v26  ;;  %v521_v48 = vmul.f32 %v858_v46, %v505_v29 }
 0x149   : > { %840 = vrot.lane.b32.xlu0 %v839_v39, %s997_s13  ;;  %s933_s13 = sshra.s32 %s631_s10, 4  ;;  %s934_s13 = int_to_ptr.hbm [resolvable:$true] %s933_s13 }
 0x14a   : > { %s935_s9 = scalar_lea.hbm %s934_s13, 8  ;;  %p940_p3 = scmp.lt.s32.totalorder %s934_s13, %s1194_s8 }
 0x14b   : > { %p936_p0 = scmp.ne.s32.totalorder %s934_s13, %s935_s9  ;;  %p941_p4 = scmp.lt.s32.totalorder %s939_s17, %s935_s9 }
 0x14d   : > { %p937_p1 = pnand %p936_p0, %p1081_p5  ;;  %p942_p7 = por %p941_p4, %p940_p3 }
 0x14f   : > { %p938_p2 = pneg %p937_p1 }
 0x151   : > { %p943_p8 = pnand %p942_p7, %p938_p2 }
 0x16b   : > { %522 = vxpose.xlu0.b32.start [1/2] (short) (narrow) %v520_v47, 8 }
 0x173   : > { %523 = vxpose.xlu0.b32.end [2/2] (short) (narrow) %v521_v48, 8 }
 0x1bb   : > { %v841_v49 = vpop.permute.xlu0 %840 }
 0x1bc   : > { %v843_v50 = vunpack.i.h.bf16 %v841_v49  ;;  %v842_v51 = vunpack.i.l.bf16 %v841_v49 }
 0x1be   : > { %v461_v52 = vsel %vm390_vm0, %v852_v24, %v842_v51  ;;  %v460_v53 = vsel %vm390_vm0, %v850_v23, %v843_v50 }
 0x1bf   : > { %572 = vmatpush.msra.mxu3 %v461_v52 }
 0x1c1   : > { %573 = vmatpush.msra.mxu3 %v460_v53 }
 0x1c3   : > { %602 = vmatpush.msrb.mxu3 %v585_v54 }
 0x1c5   : > { %603 = vmatpush.msrb.mxu3 %v584_v55 }
 0x1c7   : > { %604 = vmatpush.msrb.mxu3 %v583_v56 }
 0x1c9   : > { %605 = vmatpush.msrb.mxu3 %v582_v57 }
 0x1cb   : > { %606 = vmatpush.msrb.mxu3 %v581_v58 }
 0x1cd   : > { %607 = vmatpush.msrb.mxu3 %v580_v59 }
 0x1cf   : > { %608 = vmatpush.msrb.mxu3 %v579_v60 }
 0x1d1   : > { %609 = vmatpush.msrb.mxu3 %v578_v62 }
 0x20f   : > { %v538_v61 = vpop.trf.xlu0 }
 0x210   : > { %762 = vmatmul.msk.f32.vlgmr.msra.gmra.mxu3 %vm554_vm4, %v538_v61 }
 0x293   : > { %v575_v63 = vpop.f32.mrf.mxu3 }
 0x294   : > { %763 = vmatmul.msk.f32.vlgmr.msrb.gmra.mxu3 %vm590_vm5, %v575_v63 }
 0x317   : > { %v611_v1 = vpop.f32.mrf.mxu3 }
 0x318   : > { %v612_v2 = vadd.f32 %v848_v0, %v611_v1 }
 0x31a   : > { %614 = vst [vmem:[%s354_s20] sm:$0xff] %v612_v2 }
 0x31b   : > { %946 = shalt.err (!%p943_p8)
}
 0x31c   : > { %781 = dma.vmem_to_hbm [thread:$0]  (%p1081_p5), %s629_s26, 128, %s631_s10, %s616_s12  }
 0x31d PF: > { %p798_p9 = scmp.ge.s32.totalorder %s989_s30, 2  ;;  %s642_s18 = sand.u32 1, %s977_s27  }
 0x31e   : > { %s643_s24 = scalar_lea.sflag [#allocation4], %s642_s18 }
 0x31f   : > { %p791_p10 = pnand %p798_p9, %p1085_p6 }
 0x321   : > { %p792_p11 = pneg %p791_p10 }
 0x323   : > { %972 = dma.done.wait (%p792_p11), %s643_s24, 128  }
 0x324   : > { %974 = vsyncadd (%p792_p11), %s643_s24, 4294967168  ;;  %p20_p12 = scmp.ge.s32.totalorder %s1068_s11, 4   ;;  %s1198_s27 = smov %s981_s28 }
 0x325   : > { %s1199_s28 = smov %s985_s29  ;;  %s1200_s29 = smov %s1079_s14 }
 0x326   : > { %s1201_s30 = smov %s1068_s11  ;;  %22 = sbr.rel (!%p20_p12) target bundleno = 5 (0x5), region = 104 }
 0x32b   :  { %649 = vsyncpa [#allocation3], 1 }
 0x32c   :  { %651 = vsyncpa [#allocation3 + $0x1], 1 }
 0x32d   :  { %652 = vsyncpa [#allocation6], 1 }
 0x32e   :  { %653 = vsyncpa [#allocation4], 1 }
 0x32f   :  { %655 = vsyncpa [#allocation4 + $0x1], 1 }

</bundles_post_ra>
